<compile_context>
chip_gen: v7x
topology: tpu7x:2x2x1
jax: 0.10.0
libtpu: 0.0.40
codegen_flags: <defaults>
</compile_context>

<pallas_src>
import jax
import jax.numpy as jnp
from jax.experimental import pallas as pl
from jax.experimental.pallas import tpu as pltpu

LANE = 128
SUBLANE = 8


def _round_up(n, m):
    return ((n + m - 1) // m) * m


def dqn_kernel(xt_ref, w1t_ref, b1_ref, w2t_ref, b2_ref, w3t_ref, b3_ref, ot_ref):
    # All matmuls are (small M, K) x (K, tb): batch is the lane/N dimension.
    # fc1 + ReLU : (hp, in) @ (in, tb) -> (hp, tb), f32 accumulate/epilogue.
    h1 = jnp.dot(w1t_ref[...], xt_ref[...], preferred_element_type=jnp.float32)
    h1 = jnp.maximum(h1 + b1_ref[...], 0.0)
    # fc2 + ReLU : (hp, hp) @ (hp, tb) -> (hp, tb)
    h2 = jnp.dot(w2t_ref[...], h1.astype(jnp.bfloat16),
                 preferred_element_type=jnp.float32)
    h2 = jnp.maximum(h2 + b2_ref[...], 0.0)
    # fc3 (no activation) : (op, hp) @ (hp, tb) -> (op, tb) sublane-padded store.
    out = jnp.dot(w3t_ref[...], h2.astype(jnp.bfloat16),
                  preferred_element_type=jnp.float32)
    ot_ref[...] = (out + b3_ref[...]).astype(ot_ref.dtype)


def _prepare_params(params):
    """Transpose params to (out, in) layout, pad out-dims to multiples of 8.

    Zero padding is exact: padded hidden/output rows have zero weights and zero
    bias -> contribute 0 (and padded output rows are sliced away by the wrapper).
    Weights -> bf16 (MXU operands); biases stay f32 (added to f32 accumulator).
    """
    w1, b1, w2, b2, w3, b3 = params            # w: (in, out), b: (1, out)
    in_size, h = w1.shape
    out_size = w3.shape[1]
    hp = _round_up(h, SUBLANE)
    op = _round_up(out_size, SUBLANE)

    def pad_t(w, rows, cols):                  # (in, out) -> zero-padded (rows, cols) = W^T
        z = jnp.zeros((rows, cols), w.dtype)
        return z.at[: w.shape[1], : w.shape[0]].set(w.T)

    def pad_b(b, rows):                        # (1, out) -> zero-padded column (rows, 1)
        z = jnp.zeros((rows, 1), b.dtype)
        return z.at[: b.shape[1], :].set(b.T)

    w1t = pad_t(w1, hp, in_size).astype(jnp.bfloat16)   # (hp, in)
    w2t = pad_t(w2, hp, hp).astype(jnp.bfloat16)        # (hp, hp)
    w3t = pad_t(w3, op, hp).astype(jnp.bfloat16)        # (op, hp)
    b1t, b2t, b3t = pad_b(b1, hp), pad_b(b2, hp), pad_b(b3, op)
    return (w1t, b1t, w2t, b2t, w3t, b3t), (hp, op)


def _choose_tile(batch, block_b):
    """Batch tile: multiple of 128 lanes; keep >=2 grid steps for big batches."""
    bp = _round_up(batch, LANE)
    tb = min(_round_up(block_b, LANE), bp)     # round block_b defensively
    if bp == tb and bp >= 2 * LANE:            # one huge tile would idle v7x's 2nd TC
        tb = _round_up((bp + 1) // 2, LANE)
    return tb


def dqn_forward(x, params, *, block_b=8192):
    """x: (batch, in_size) f32.  params = (w1, b1, w2, b2, w3, b3),
    w_i shaped (in, out), b_i shaped (1, out).  Returns (batch, out_size) f32."""
    batch, in_size = x.shape
    out_size = params[4].shape[1]

    (w1t, b1t, w2t, b2t, w3t, b3t), (hp, op) = _prepare_params(params)

    tb = _choose_tile(batch, block_b)
    b_pad = _round_up(batch, tb)

    # x^T in bf16 (batch on lanes). Only pad the batch axis when needed.
    xt = jnp.asarray(x, jnp.bfloat16).T                      # (in_size, batch)
    if b_pad != batch:
        xt = jnp.pad(xt, ((0, 0), (0, b_pad - batch)))       # padded cols are discarded

    grid = (b_pad // tb,)
    const = lambda i: (0, 0)   # weights/biases: same block every step -> stay resident

    flops = 2 * b_pad * (in_size * hp + hp * hp + hp * op)
    bytes_accessed = (
        xt.size * 2 + op * b_pad * 4                         # x^T in (bf16) + out^T (f32)
        + (w1t.size + w2t.size + w3t.size) * 2               # bf16 weights
        + (b1t.size + b2t.size + b3t.size) * 4               # f32 biases
    )

    out_t = pl.pallas_call(
        dqn_kernel,
        out_shape=jax.ShapeDtypeStruct((op, b_pad), jnp.float32),
        grid=grid,
        in_specs=[
            pl.BlockSpec((in_size, tb), lambda i: (0, i)),   # x^T: tiled over batch lanes
            pl.BlockSpec((hp, in_size), const),              # W1^T
            pl.BlockSpec((hp, 1), const),                    # b1
            pl.BlockSpec((hp, hp), const),                   # W2^T
            pl.BlockSpec((hp, 1), const),                    # b2
            pl.BlockSpec((op, hp), const),                   # W3^T
            pl.BlockSpec((op, 1), const),                    # b3
        ],
        out_specs=pl.BlockSpec((op, tb), lambda i: (0, i)),
        compiler_params=pltpu.CompilerParams(
            dimension_semantics=("parallel",)),
        cost_estimate=pl.CostEstimate(
            flops=flops, transcendentals=0, bytes_accessed=bytes_accessed),
    )(xt, w1t, b1t, w2t, b2t, w3t, b3t)

    return out_t[:out_size, :batch].T


def init_params(key, input_size, hidden_size, output_size):
    """Deterministic init mimicking PyTorch nn.Linear defaults (uniform +-1/sqrt(fan_in))."""
    def linear(k, fan_in, fan_out):
        kw, kb = jax.random.split(k)
        bound = 1.0 / jnp.sqrt(jnp.float32(fan_in))
        # Stored (in, out); PyTorch stores (out, in) and does x @ W.T -> same math.
        w = jax.random.uniform(kw, (fan_in, fan_out), jnp.float32, -bound, bound)
        b = jax.random.uniform(kb, (1, fan_out), jnp.float32, -bound, bound)
        return w, b

    k1, k2, k3 = jax.random.split(key, 3)
    w1, b1 = linear(k1, input_size, hidden_size)
    w2, b2 = linear(k2, hidden_size, hidden_size)
    w3, b3 = linear(k3, hidden_size, output_size)
    return w1, b1, w2, b2, w3, b3


def reference_forward(x, params):
    """Matches the kernel's numerics: bf16 matmul operands, f32 accumulation/epilogue."""
    w1, b1, w2, b2, w3, b3 = params
    bf = jnp.bfloat16
    h1 = jnp.maximum(
        jnp.dot(x.astype(bf), w1.astype(bf), preferred_element_type=jnp.float32) + b1, 0.0)
    h2 = jnp.maximum(
        jnp.dot(h1.astype(bf), w2.astype(bf), preferred_element_type=jnp.float32) + b2, 0.0)
    return jnp.dot(h2.astype(bf), w3.astype(bf), preferred_element_type=jnp.float32) + b3


if __name__ == "__main__":
    # CartPole-like sizes: 4-dim observation, 32 hidden units, 2 actions.
    input_size, hidden_size, output_size = 4, 32, 2
    key = jax.random.PRNGKey(0)
    kx, kparam = jax.random.split(key)
    params = init_params(kparam, input_size, hidden_size, output_size)

    # Case 1: tiny policy batch (single grid step; batch padded 16 -> 128 lanes).
    x_small = jax.random.normal(kx, (16, input_size), jnp.float32)
    out_small = jax.block_until_ready(dqn_forward(x_small, params))
    ref_small = reference_forward(x_small, params)
    assert out_small.shape == (16, output_size)
    assert jnp.allclose(out_small, ref_small, atol=1e-3, rtol=1e-3), \
        float(jnp.max(jnp.abs(out_small - ref_small)))

    # Case 2: replay-buffer style batch with a small block_b to exercise a
    # 2-step batch grid plus batch padding (200 -> 256). Production keeps the
    # default block_b=8192.
    x_big = jax.random.normal(kx, (200, input_size), jnp.float32)
    out_big = jax.block_until_ready(dqn_forward(x_big, params, block_b=128))
    ref_big = reference_forward(x_big, params)
    assert out_big.shape == (200, output_size)
    assert jnp.allclose(out_big, ref_big, atol=1e-3, rtol=1e-3), \
        float(jnp.max(jnp.abs(out_big - ref_big)))

    print("KERNEL_OK")
</pallas_src>

<mosaic_0001>
module attributes {stable_mosaic.version = 11 : i64} {
  func.func @dqn_kernel(%arg0: i32, %arg1: memref<4x128xbf16, #tpu.memory_space<vmem>>, %arg2: memref<32x4xbf16, #tpu.memory_space<vmem>>, %arg3: memref<32x1xf32, #tpu.memory_space<vmem>>, %arg4: memref<32x32xbf16, #tpu.memory_space<vmem>>, %arg5: memref<32x1xf32, #tpu.memory_space<vmem>>, %arg6: memref<8x32xbf16, #tpu.memory_space<vmem>>, %arg7: memref<8x1xf32, #tpu.memory_space<vmem>>, %arg8: memref<8x128xf32, #tpu.memory_space<vmem>>) attributes {dimension_semantics = [#tpu.dimension_semantics<parallel>], iteration_bounds = array<i64: 1>, scalar_prefetch = 0 : i64, scratch_operands = 0 : i64, tpu.core_type = #tpu.core_type<tc>, window_params = [{transform_indices = @transform_0, window_bounds = array<i64: 4, 128>}, {pipeline_mode = #tpu.pipeline_mode<synchronous>, transform_indices = @transform_1, window_bounds = array<i64: 32, 4>}, {pipeline_mode = #tpu.pipeline_mode<synchronous>, transform_indices = @transform_2, window_bounds = array<i64: 32, 1>}, {pipeline_mode = #tpu.pipeline_mode<synchronous>, transform_indices = @transform_3, window_bounds = array<i64: 32, 32>}, {pipeline_mode = #tpu.pipeline_mode<synchronous>, transform_indices = @transform_4, window_bounds = array<i64: 32, 1>}, {pipeline_mode = #tpu.pipeline_mode<synchronous>, transform_indices = @transform_5, window_bounds = array<i64: 8, 32>}, {pipeline_mode = #tpu.pipeline_mode<synchronous>, transform_indices = @transform_6, window_bounds = array<i64: 8, 1>}, {transform_indices = @transform_7, window_bounds = array<i64: 8, 128>}]} {
    %c0 = arith.constant 0 : index
    %c0_0 = arith.constant 0 : index
    %0 = vector.load %arg2[%c0, %c0_0] : memref<32x4xbf16, #tpu.memory_space<vmem>>, vector<32x4xbf16>
    %c0_1 = arith.constant 0 : index
    %c0_2 = arith.constant 0 : index
    %1 = vector.load %arg1[%c0_1, %c0_2] : memref<4x128xbf16, #tpu.memory_space<vmem>>, vector<4x128xbf16>
    %cst = arith.constant dense<0.000000e+00> : vector<32x128xf32>
    %2 = tpu.matmul %0, %1, %cst {dimension_numbers = #tpu.dot_dimension_numbers<[1], [0], [0], [1], [0, 0, 1, 1], [], []>} : vector<32x4xbf16>, vector<4x128xbf16>, vector<32x128xf32> -> vector<32x128xf32>
    %c0_3 = arith.constant 0 : index
    %c0_4 = arith.constant 0 : index
    %3 = vector.load %arg3[%c0_3, %c0_4] : memref<32x1xf32, #tpu.memory_space<vmem>>, vector<32x1xf32>
    %4 = vector.broadcast %3 : vector<32x1xf32> to vector<32x128xf32>
    %5 = arith.addf %2, %4 : vector<32x128xf32>
    %cst_5 = arith.constant 0.000000e+00 : f32
    %6 = vector.broadcast %cst_5 : f32 to vector<32x128xf32>
    %7 = arith.maximumf %5, %6 : vector<32x128xf32>
    %c0_6 = arith.constant 0 : index
    %c0_7 = arith.constant 0 : index
    %8 = vector.load %arg4[%c0_6, %c0_7] : memref<32x32xbf16, #tpu.memory_space<vmem>>, vector<32x32xbf16>
    %9 = arith.truncf %7 : vector<32x128xf32> to vector<32x128xbf16>
    %cst_8 = arith.constant dense<0.000000e+00> : vector<32x128xf32>
    %10 = tpu.matmul %8, %9, %cst_8 {dimension_numbers = #tpu.dot_dimension_numbers<[1], [0], [0], [1], [0, 0, 1, 1], [], []>} : vector<32x32xbf16>, vector<32x128xbf16>, vector<32x128xf32> -> vector<32x128xf32>
    %c0_9 = arith.constant 0 : index
    %c0_10 = arith.constant 0 : index
    %11 = vector.load %arg5[%c0_9, %c0_10] : memref<32x1xf32, #tpu.memory_space<vmem>>, vector<32x1xf32>
    %12 = vector.broadcast %11 : vector<32x1xf32> to vector<32x128xf32>
    %13 = arith.addf %10, %12 : vector<32x128xf32>
    %cst_11 = arith.constant 0.000000e+00 : f32
    %14 = vector.broadcast %cst_11 : f32 to vector<32x128xf32>
    %15 = arith.maximumf %13, %14 : vector<32x128xf32>
    %c0_12 = arith.constant 0 : index
    %c0_13 = arith.constant 0 : index
    %16 = vector.load %arg6[%c0_12, %c0_13] : memref<8x32xbf16, #tpu.memory_space<vmem>>, vector<8x32xbf16>
    %17 = arith.truncf %15 : vector<32x128xf32> to vector<32x128xbf16>
    %cst_14 = arith.constant dense<0.000000e+00> : vector<8x128xf32>
    %18 = tpu.matmul %16, %17, %cst_14 {dimension_numbers = #tpu.dot_dimension_numbers<[1], [0], [0], [1], [0, 0, 1, 1], [], []>} : vector<8x32xbf16>, vector<32x128xbf16>, vector<8x128xf32> -> vector<8x128xf32>
    %c0_15 = arith.constant 0 : index
    %c0_16 = arith.constant 0 : index
    %19 = vector.load %arg7[%c0_15, %c0_16] : memref<8x1xf32, #tpu.memory_space<vmem>>, vector<8x1xf32>
    %20 = vector.broadcast %19 : vector<8x1xf32> to vector<8x128xf32>
    %21 = arith.addf %18, %20 : vector<8x128xf32>
    %c0_17 = arith.constant 0 : index
    %c0_18 = arith.constant 0 : index
    %22 = vector.load %arg8[%c0_17, %c0_18] : memref<8x128xf32, #tpu.memory_space<vmem>>, vector<8x128xf32>
    tpu.vector_store %arg8[%c0_17, %c0_18], %21 {strides = array<i32>} : memref<8x128xf32, #tpu.memory_space<vmem>>, vector<8x128xf32>,
    return
  }
  func.func @transform_0(%arg0: i32) -> (i32, i32) {
    %c0_i32 = arith.constant 0 : i32
    %c0_i32_0 = arith.constant 0 : i32
    return %c0_i32, %arg0 : i32, i32
  }
  func.func @transform_1(%arg0: i32) -> (i32, i32) {
    %c0_i32 = arith.constant 0 : i32
    %c0_i32_0 = arith.constant 0 : i32
    %c0_i32_1 = arith.constant 0 : i32
    return %c0_i32, %c0_i32_0 : i32, i32
  }
  func.func @transform_2(%arg0: i32) -> (i32, i32) {
    %c0_i32 = arith.constant 0 : i32
    %c0_i32_0 = arith.constant 0 : i32
    %c0_i32_1 = arith.constant 0 : i32
    return %c0_i32, %c0_i32_0 : i32, i32
  }
  func.func @transform_3(%arg0: i32) -> (i32, i32) {
    %c0_i32 = arith.constant 0 : i32
    %c0_i32_0 = arith.constant 0 : i32
    %c0_i32_1 = arith.constant 0 : i32
    return %c0_i32, %c0_i32_0 : i32, i32
  }
  func.func @transform_4(%arg0: i32) -> (i32, i32) {
    %c0_i32 = arith.constant 0 : i32
    %c0_i32_0 = arith.constant 0 : i32
    %c0_i32_1 = arith.constant 0 : i32
    return %c0_i32, %c0_i32_0 : i32, i32
  }
  func.func @transform_5(%arg0: i32) -> (i32, i32) {
    %c0_i32 = arith.constant 0 : i32
    %c0_i32_0 = arith.constant 0 : i32
    %c0_i32_1 = arith.constant 0 : i32
    return %c0_i32, %c0_i32_0 : i32, i32
  }
  func.func @transform_6(%arg0: i32) -> (i32, i32) {
    %c0_i32 = arith.constant 0 : i32
    %c0_i32_0 = arith.constant 0 : i32
    %c0_i32_1 = arith.constant 0 : i32
    return %c0_i32, %c0_i32_0 : i32, i32
  }
  func.func @transform_7(%arg0: i32) -> (i32, i32) {
    %c0_i32 = arith.constant 0 : i32
    %c0_i32_0 = arith.constant 0 : i32
    return %c0_i32, %arg0 : i32, i32
  }
}

</mosaic_0001>

<bundles_post_ra>
// kernel: tpu_custom_call.1
= control target key start
LH: loop header
LB: loop body
LE: loop exit
PB: predicated region body
PF: predicated region fallthrough
CT: control target
= control target key end

     0   :  { %vm74_vm0 = vcmask 1041408   ;;  %vm67_vm1 = vcmask 31744   ;;  %v374_v5 = vmov 0   ;;  %s478_s0 = inlined_call_operand.vmem [shape: bf16[4,128], index: 0, kind: input, shape index: {}]   ;;  %s479_s1 = inlined_call_operand.vmem [shape: bf16[32,4], index: 1, kind: input, shape index: {}]   ;;  %s480_s2 = inlined_call_operand.vmem [shape: f32[32,1], index: 2, kind: input, shape index: {}]   ;;  %s481_s3 = inlined_call_operand.vmem [shape: bf16[32,32], index: 3, kind: input, shape index: {}]   ;;  %s482_s4 = inlined_call_operand.vmem [shape: f32[32,1], index: 4, kind: input, shape index: {}]   ;;  %s483_s5 = inlined_call_operand.vmem [shape: bf16[8,32], index: 5, kind: input, shape index: {}]   ;;  %s484_s6 = inlined_call_operand.vmem [shape: f32[8,1], index: 6, kind: input, shape index: {}]   ;;  %s485_s7 = inlined_call_operand.hbm [shape: f32[8,128], index: 7, kind: output, shape index: {}]  }
   0x1   :  { %v32_v0 = vld [vmem:[%s478_s0] sm:$0x3]  ;;  %v347_v3 = vld [vmem:[%s479_s1 + $0x8] sm:$0xff]   ;;  %344 = vset.pattern.permute.xlu0 %v374_v5  ;;  %345 = vset.pattern.permute.xlu1 %v374_v5  ;;  %v35_v6 = vld [vmem:[%s480_s2 + $0x10] sm:$0xff] }
   0x2   :  { %v346_v1 = vld [vmem:[%s479_s1] sm:$0xff]   ;;  %339 = vmatprep.subr.msk.bf16.mxu0 %vm74_vm0, %v32_v0  ;;  %v76_v2 = vsel %vm74_vm0, %v32_v0, 0  ;;  %49 = vperm.xlu1 %345, %v35_v6   ;;  %v34_v7 = vld [vmem:[%s480_s2 + $0x8] sm:$0xff]  ;;  %v36_v8 = vld [vmem:[%s480_s2 + $0x18] sm:$0xff] }
   0x3   :  { %318 = vmatpush3.bf16.msra.mxu0 %v76_v2  ;;  %319 = vmatprep.mubr.msk.bf16.mxu0 %vm67_vm1, %v346_v1  ;;  %v33_v4 = vld [vmem:[%s480_s2] sm:$0xff] }
   0x4   :  { %39 = vperm.xlu0 %344, %v33_v4  }
   0x6   :  { %320 = vmatmul.mubr.msk.bf16.vlgmr.msra.gmra.mrb[0].mxu0 %vm67_vm1, %v347_v3 }
   0x7   :  { %12 = vsyncpa [#allocation3], 0  ;;  %54 = vperm.xlu1 %345, %v36_v8   ;;  %v137_v9 = vld [vmem:[%s482_s4] sm:$0xff]  ;;  %v138_v10 = vld [vmem:[%s482_s4 + $0x8] sm:$0xff]  ;;  %vm171_vm2 = vcmask 261120   ;;  %v375_v34 = vmov 0.0  }
   0x8   :  { %44 = vperm.xlu0 %344, %v34_v7   ;;  %v139_v11 = vld [vmem:[%s482_s4 + $0x10] sm:$0xff]  ;;  %v140_v12 = vld [vmem:[%s482_s4 + $0x18] sm:$0xff]  ;;  %v234_v13 = vld [vmem:[%s484_s6] sm:$0xff]  ;;  %331 = vmatprep.subr.bf16.mxu0 %v375_v34  ;;  %vm376_vm3 = vmmov 0   ;;  %s377_s25 = smov [#allocation2]  }
   0x9   :  { %v348_v14 = vld [vmem:[%s481_s3] sm:$0xff]   ;;  %v349_v33 = vld [vmem:[%s481_s3 + $0x8] sm:$0xff]   ;;  %335 = vmatprep.mubr.msk.bf16.mxu0 %vm376_vm3, %v375_v34  ;;  %s290_s26 = sshll.u32 %s377_s25, 4  ;;  %s291_s26 = int_to_ptr.vmem [resolvable:$true] %s290_s26 }
   0xa   :  { %327 = vmatprep.mubr.msk.bf16.mxu1 %vm171_vm2, %v348_v14  ;;  %v231_v53 = vld [vmem:[%s483_s5] sm:$0xf]  ;;  %s350_s27 = scalar_lea.vmem %s291_s26, 128  ;;  %p355_p1 = scmp.lt.s32.totalorder %s291_s26, %s291_s26 }
   0xb   :  { %148 = vperm.xlu1 %345, %v138_v10   ;;  %p351_p0 = scmp.ne.s32.totalorder %s291_s26, %s350_s27  ;;  %p356_p2 = scmp.lt.s32.totalorder %s350_s27, %s350_s27 }
   0xc   :  { %143 = vperm.xlu0 %344, %v137_v9  }
   0xd   :  { %p357_p3 = por %p356_p2, %p355_p1 }
   0xf   :  { %158 = vperm.xlu1 %345, %v140_v12   ;;  %p358_p4 = pnand %p357_p3, %p351_p0 }
  0x10   :  { %153 = vperm.xlu0 %344, %v139_v11  }
  0x14   :  { %237 = vperm.xlu0 %344, %v234_v13  }
  0x81   :  { %v50_v15 = vpop.permute.xlu1 %49 }
  0x83   :  { %v40_v16 = vpop.permute.xlu0 %39 }
  0x86   :  { %v55_v20 = vpop.permute.xlu1 %54 }
  0x87   :  { %v45_v23 = vpop.permute.xlu0 %44 }
  0x8a   :  { %v149_v36 = vpop.permute.xlu1 %148 }
  0x8b   :  { %v144_v35 = vpop.permute.xlu0 %143 }
  0x8e   :  { %v159_v41 = vpop.permute.xlu1 %158 }
  0x8f   :  { %v154_v37 = vpop.permute.xlu0 %153 }
  0x93   :  { %v238_v54 = vpop.permute.xlu0 %237 }
  0xd9   :  { %v321_v17 = vpop.f32.mrb[0].mxu0 }
  0xda   :  { %v121_v18 = vadd.f32 %v321_v17, %v50_v15  ;;  %v112_v19 = vpop.f32.mrb[1].mxu0 }
  0xdb   :  { %v113_v21 = vadd.f32 %v112_v19, %v40_v16  ;;  %v322_v22 = vpop.f32.mrb[2].mxu0 }
  0xdc   :  { %v124_v24 = vadd.f32 %v322_v22, %v55_v20  ;;  %v115_v25 = vpop.f32.mrb[3].mxu0  ;;  %v129_v27 = vmax.f32 %v121_v18, 0.0 }
  0xdd   :  { %v116_v26 = vadd.f32 %v115_v25, %v45_v23  ;;  %v127_v29 = vmax.f32 %v113_v21, 0.0 }
  0xde   :  { %v130_v28 = vmax.f32 %v124_v24, 0.0 }
  0xdf   :  { %v128_v30 = vmax.f32 %v116_v26, 0.0 }
  0xe0   :  { %v136_v31 = vpack.c.bf16 %v130_v28, %v129_v27 }
  0xe1   :  { %v135_v32 = vpack.c.bf16 %v128_v30, %v127_v29 }
  0xe3   :  { %323 = vmatprep.subr.bf16.mxu1 %v135_v32 }
  0xe4   :  { %324 = vmatpush3.bf16.msra.mxu1 %v135_v32 }
  0xe5   :  { %325 = vmatprep.subr.bf16.mxu1 %v136_v31 }
  0xe8   :  { %326 = vmatpush3.bf16.msra.mxu1 %v136_v31 }
  0xeb   :  { %328 = vmatmul.mubr.msk.bf16.vlgmr.msra.gmra.mrb[0].mxu1 %vm171_vm2, %v349_v33 }
 0x1be   :  { %v329_v38 = vpop.f32.mrb[0].mxu1 }
 0x1bf   :  { %v221_v39 = vadd.f32 %v329_v38, %v154_v37  ;;  %v212_v40 = vpop.f32.mrb[1].mxu1 }
 0x1c0   :  { %v213_v42 = vadd.f32 %v212_v40, %v144_v35  ;;  %v330_v43 = vpop.f32.mrb[2].mxu1 }
 0x1c1   :  { %v224_v44 = vadd.f32 %v330_v43, %v159_v41  ;;  %v215_v45 = vpop.f32.mrb[3].mxu1  ;;  %v229_v47 = vmax.f32 %v221_v39, 0.0 }
 0x1c2   :  { %v216_v46 = vadd.f32 %v215_v45, %v149_v36  ;;  %v227_v49 = vmax.f32 %v213_v42, 0.0 }
 0x1c3   :  { %v230_v48 = vmax.f32 %v224_v44, 0.0 }
 0x1c4   :  { %v228_v50 = vmax.f32 %v216_v46, 0.0 }
 0x1c5   :  { %v233_v51 = vpack.c.bf16 %v230_v48, %v229_v47 }
 0x1c6   :  { %v232_v52 = vpack.c.bf16 %v228_v50, %v227_v49 }
 0x1c8   :  { %332 = vmatpush3.bf16.msra.mxu0 %v232_v52 }
 0x1c9   :  { %333 = vmatprep.subr.bf16.mxu0 %v375_v34 }
 0x1cc   :  { %334 = vmatpush3.bf16.msra.mxu0 %v233_v51 }
 0x1cf   :  { %336 = vmatmul.mubr.msk.bf16.vlgmr.msra.gmra.mrb[4].mxu0 %vm171_vm2, %v231_v53 }
 0x2a2   :  { %v277_v55 = vpop.f32.mrb[4].mxu0 }
 0x2a3   :  { %v278_v56 = vadd.f32 %v277_v55, %v238_v54  ;;  %v337_v57 = vpop.f32.mrb[5].mxu0 }
 0x2a4   :  { %v280_v58 = vpop.f32.mrb[6].mxu0 }
 0x2a5   :  { %283 = vst [vmem:[#allocation2] sm:$0xff] %v278_v56  ;;  %v338_v59 = vpop.f32.mrb[7].mxu0 }
 0x2a6   :  { %361 = shalt.err (!%p358_p4)
}
 0x2a7   :  { %s362_s29 = scalar_lea.hbm %s485_s7, 128 }
 0x2a8   :  { %p363_p5 = scmp.ne.s32.totalorder %s485_s7, %s362_s29  ;;  %p366_p6 = scmp.lt.u32.totalorder %s362_s29, %s485_s7 }
 0x2aa   :  { %p368_p7 = pnand %p366_p6, %p363_p5 }
 0x2ac   :  { %371 = shalt.err (!%p368_p7)
}
 0x2ad   :  { %293 = dma.vmem_to_hbm [thread:$0]  %s291_s26, 128, %s485_s7, [#allocation3]  }
 0x2ae   :  { %372 = dma.done.wait [#allocation3], 128  }
 0x2af   :  { %373 = vsyncadd [#allocation3], 4294967168 }
 0x2b0   :  { %297 = vsyncpa [#allocation3], 1 }

</bundles_post_ra>
